<compile_context>
chip_gen: v5e
topology: v5e:2x2
jax: 0.10.0
libtpu: 0.0.40
codegen_flags: <defaults>
</compile_context>

<pallas_src>
import functools

import jax
import jax.numpy as jnp
from jax.experimental import pallas as pl
from jax.experimental.pallas import tpu as pltpu

_LANE = 128
_SUBLANE = 8


def _round_up(n, m):
    return (n + m - 1) // m * m


def _pad2(a, rows, cols):
    r, c = a.shape
    if r == rows and c == cols:
        return a
    return jnp.pad(a, ((0, rows - r), (0, cols - c)))


# ---------------------------------------------------------------------------
# Kernel body: whole MLP fused, one grid axis over the batch.
# ---------------------------------------------------------------------------
def _odefunc_kernel(x_ref, w0_ref, b0_ref, w1_ref, b1_ref, w2_ref, b2_ref,
                    out_ref, *, backwards: bool):
    # MXU operand dtype follows the weight storage dtype (bf16 default / f32);
    # accumulation is always f32 via preferred_element_type.
    cdt = w0_ref.dtype
    x = x_ref[...].astype(cdt)                                  # [TB, n_in]

    # Linear 0 + ReLU
    h = jnp.dot(x, w0_ref[...], preferred_element_type=jnp.float32)
    h = jnp.maximum(h + b0_ref[...].astype(jnp.float32), 0.0)

    # Linear 1 + ReLU
    h = jnp.dot(h.astype(cdt), w1_ref[...], preferred_element_type=jnp.float32)
    h = jnp.maximum(h + b1_ref[...].astype(jnp.float32), 0.0)

    # Linear 2 (output head)
    grad = jnp.dot(h.astype(cdt), w2_ref[...], preferred_element_type=jnp.float32)
    grad = grad + b2_ref[...].astype(jnp.float32)

    if backwards:
        grad = -grad                                            # free VPU slot

    out_ref[...] = grad.astype(out_ref.dtype)


# ---------------------------------------------------------------------------
# One-time parameter prep (hoisted out of the per-eval path).
# ---------------------------------------------------------------------------
def prepare_params(params, weight_dtype=jnp.bfloat16):
    """Call ONCE and reuse across all ODE forward evaluations.

    Pads the hidden (n_units) dims to a multiple of 128 lanes so in-kernel
    intermediates are lane-dense, and casts the weights to the MXU storage
    dtype (bf16 by default).  Biases stay f32 (added post-accumulation in f32).
    n_in / n_out are NOT padded: the kernel uses full-extent blocks for them,
    so x / out never take a pad/slice HBM round trip per evaluation.
    """
    w0, b0, w1, b1, w2, b2 = params
    n_in, n_units = w0.shape
    n_out = w2.shape[1]
    n_units_p = _round_up(n_units, _LANE)

    b0 = jnp.asarray(b0).reshape(1, -1)
    b1 = jnp.asarray(b1).reshape(1, -1)
    b2 = jnp.asarray(b2).reshape(1, -1)

    w0p = _pad2(w0, n_in, n_units_p).astype(weight_dtype)
    w1p = _pad2(w1, n_units_p, n_units_p).astype(weight_dtype)
    w2p = _pad2(w2, n_units_p, n_out).astype(weight_dtype)
    b0p = _pad2(b0, 1, n_units_p).astype(jnp.float32)
    b1p = _pad2(b1, 1, n_units_p).astype(jnp.float32)
    b2p = b2.astype(jnp.float32)
    return (w0p, b0p, w1p, b1p, w2p, b2p)


def _choose_tile_b(B, tile_b):
    tile_b = _round_up(max(_SUBLANE, tile_b), _SUBLANE)
    # Never larger than the (sublane-rounded) batch.
    tile_b = min(tile_b, _round_up(B, _SUBLANE))
    # Keep the batch grid at >= 2 steps so ("parallel",) can shard across both
    # TensorCores on v7x; negligible cost on single-TC chips.
    if B > _SUBLANE:
        tile_b = min(tile_b, _round_up(pl.cdiv(B, 2), _SUBLANE))
    return tile_b


# ---------------------------------------------------------------------------
# Forward wrapper: exactly one pallas_call, no per-eval pad/slice XLA ops.
# ---------------------------------------------------------------------------
def odefunc_forward(t, x, prepared_params, backwards=False, *, tile_b=512):
    """Pallas implementation of _ODEfunc.forward(t, x). `t` is unused (as in
    PyTorch).  `prepared_params` must come from prepare_params().
    tile_b: batch tile; 512-1024 works well on v6e/v7x, keep ~256-512 on v5e.
    """
    del t
    w0p, b0p, w1p, b1p, w2p, b2p = prepared_params
    B, n_in = x.shape
    if w0p.shape[0] != n_in:
        raise ValueError("x feature dim does not match prepared params")
    n_units_p = w0p.shape[1]
    n_out = w2p.shape[1]

    tb = _choose_tile_b(B, tile_b)
    grid = (pl.cdiv(B, tb),)          # partial last block is masked by Pallas

    # Weight / bias blocks are grid-invariant -> single-buffered so they don't
    # double their VMEM residency.
    def _wspec(shape):
        return pl.BlockSpec(shape, lambda i: (0, 0), pipeline_mode=pl.Buffered(1))

    in_specs = [
        pl.BlockSpec((tb, n_in), lambda i: (i, 0)),
        _wspec((n_in, n_units_p)), _wspec((1, n_units_p)),
        _wspec((n_units_p, n_units_p)), _wspec((1, n_units_p)),
        _wspec((n_units_p, n_out)), _wspec((1, n_out)),
    ]
    out_spec = pl.BlockSpec((tb, n_out), lambda i: (i, 0))

    # Explicit VMEM budget from the actual block sizes: single-buffered weights
    # + double-buffered x/out tiles + headroom for the f32 intermediates.
    w_bytes = sum(int(p.size) * p.dtype.itemsize for p in prepared_params)
    io_bytes = 2 * tb * (n_in + n_out) * x.dtype.itemsize
    scratch_bytes = 2 * tb * n_units_p * 4
    vmem_limit = int(min(100 << 20,
                         max(2 * (w_bytes + io_bytes + scratch_bytes) + (4 << 20),
                             16 << 20)))

    cost = pl.CostEstimate(
        flops=2 * B * (n_in * n_units_p + n_units_p * n_units_p
                       + n_units_p * n_out),
        transcendentals=0,
        bytes_accessed=int(x.size) * x.dtype.itemsize + w_bytes
                       + B * n_out * x.dtype.itemsize,
    )

    kernel = functools.partial(_odefunc_kernel, backwards=backwards)

    # TODO(synk): if n_units is ever scaled well beyond 128 lanes (>=512), add
    # an "arbitrary" reduction grid axis over n_units with a VMEM f32
    # accumulator instead of keeping whole n_units_p x n_units_p weight blocks
    # resident (v7x VMEM is only 64 MiB).
    return pl.pallas_call(
        kernel,
        out_shape=jax.ShapeDtypeStruct((B, n_out), x.dtype),
        grid_spec=pltpu.PrefetchScalarGridSpec(
            num_scalar_prefetch=0,
            grid=grid,
            in_specs=in_specs,
            out_specs=out_spec,
        ),
        compiler_params=pltpu.CompilerParams(
            dimension_semantics=("parallel",),
            vmem_limit_bytes=vmem_limit,
        ),
        cost_estimate=cost,
    )(x, w0p, b0p, w1p, b1p, w2p, b2p)


# ---------------------------------------------------------------------------
# Init + reference + self-test.
# ---------------------------------------------------------------------------
def init_params(key, n_inputs, n_outputs, n_units=100, dtype=jnp.float32):
    """Deterministic init mimicking PyTorch Linear default (U[-1/sqrt(fan_in), +])."""
    ks = jax.random.split(key, 6)

    def lin(kw, kb, fan_in, fan_out):
        bound = 1.0 / jnp.sqrt(fan_in)
        # stored as [in, out] (transposed vs. PyTorch's [out, in])
        w = jax.random.uniform(kw, (fan_in, fan_out), dtype, -bound, bound)
        b = jax.random.uniform(kb, (1, fan_out), dtype, -bound, bound)
        return w, b

    w0, b0 = lin(ks[0], ks[1], n_inputs, n_units)
    w1, b1 = lin(ks[2], ks[3], n_units, n_units)
    w2, b2 = lin(ks[4], ks[5], n_units, n_outputs)
    return (w0, b0, w1, b1, w2, b2)


def odefunc_reference(x, params, backwards=False):
    """Pure-JAX f32 reference (works on raw or prepared/padded params)."""
    w0, b0, w1, b1, w2, b2 = [jnp.asarray(p, jnp.float32) for p in params]
    x = jnp.asarray(x, jnp.float32)
    h = jnp.maximum(x @ w0 + b0, 0.0)
    h = jnp.maximum(h @ w1 + b1, 0.0)
    grad = h @ w2 + b2
    return -grad if backwards else grad


if __name__ == "__main__":
    key = jax.random.PRNGKey(0)
    k_param, k_x = jax.random.split(key)

    # Module defaults: n_units=100 (lane-padded to 128 once in prepare_params);
    # B=10 is not a sublane multiple -> exercises the masked partial last block.
    B, n_inputs, n_outputs, n_units = 10, 32, 32, 100
    params = init_params(k_param, n_inputs, n_outputs, n_units)
    x = jax.random.normal(k_x, (B, n_inputs), jnp.float32)
    t = jnp.float32(0.0)   # unused, kept for API parity with forward(t, x)

    fwd = jax.jit(odefunc_forward, static_argnames=("backwards", "tile_b"))

    # f32 weight path (tight tolerance).
    pp_f32 = prepare_params(params, weight_dtype=jnp.float32)
    ref_f32 = odefunc_reference(x, pp_f32)
    out = jax.block_until_ready(fwd(t, x, pp_f32, backwards=False))
    assert out.shape == (B, n_outputs)
    assert jnp.allclose(out, ref_f32, atol=1e-4, rtol=1e-4)

    # backwards=True path (negated gradient).
    out_b = jax.block_until_ready(fwd(t, x, pp_f32, backwards=True))
    assert jnp.allclose(out_b, -ref_f32, atol=1e-4, rtol=1e-4)

    # Default bf16 weight storage (f32 accumulation on the MXU).
    pp_bf16 = prepare_params(params)                     # bf16 by default
    ref_bf16 = odefunc_reference(x, pp_bf16)
    out_bf16 = jax.block_until_ready(fwd(t, x, pp_bf16, backwards=False))
    assert out_bf16.shape == (B, n_outputs)
    assert out_bf16.dtype == x.dtype
    assert jnp.allclose(out_bf16, ref_bf16, atol=5e-2, rtol=5e-2)

    print("KERNEL_OK")
</pallas_src>

<mosaic_0001>
module attributes {stable_mosaic.version = 11 : i64} {
  func.func @_odefunc_kernel(%arg0: i32, %arg1: memref<8x32xf32, #tpu.memory_space<vmem>>, %arg2: memref<32x128xf32, #tpu.memory_space<vmem>>, %arg3: memref<1x128xf32, #tpu.memory_space<vmem>>, %arg4: memref<128x128xf32, #tpu.memory_space<vmem>>, %arg5: memref<1x128xf32, #tpu.memory_space<vmem>>, %arg6: memref<128x32xf32, #tpu.memory_space<vmem>>, %arg7: memref<1x32xf32, #tpu.memory_space<vmem>>, %arg8: memref<8x32xf32, #tpu.memory_space<vmem>>) attributes {dimension_semantics = [#tpu.dimension_semantics<parallel>], iteration_bounds = array<i64: 2>, scalar_prefetch = 0 : i64, scratch_operands = 0 : i64, tpu.core_type = #tpu.core_type<tc>, window_params = [{transform_indices = @transform_0, window_bounds = array<i64: 8, 32>}, {pipeline_mode = #tpu.pipeline_mode<synchronous>, transform_indices = @transform_1, window_bounds = array<i64: 32, 128>}, {pipeline_mode = #tpu.pipeline_mode<synchronous>, transform_indices = @transform_2, window_bounds = array<i64: 1, 128>}, {pipeline_mode = #tpu.pipeline_mode<synchronous>, transform_indices = @transform_3, window_bounds = array<i64: 128, 128>}, {pipeline_mode = #tpu.pipeline_mode<synchronous>, transform_indices = @transform_4, window_bounds = array<i64: 1, 128>}, {pipeline_mode = #tpu.pipeline_mode<synchronous>, transform_indices = @transform_5, window_bounds = array<i64: 128, 32>}, {pipeline_mode = #tpu.pipeline_mode<synchronous>, transform_indices = @transform_6, window_bounds = array<i64: 1, 32>}, {transform_indices = @transform_7, window_bounds = array<i64: 8, 32>}]} {
    %c0 = arith.constant 0 : index
    %c0_0 = arith.constant 0 : index
    %0 = vector.load %arg1[%c0, %c0_0] : memref<8x32xf32, #tpu.memory_space<vmem>>, vector<8x32xf32>
    %c0_1 = arith.constant 0 : index
    %c0_2 = arith.constant 0 : index
    %1 = vector.load %arg2[%c0_1, %c0_2] : memref<32x128xf32, #tpu.memory_space<vmem>>, vector<32x128xf32>
    %cst = arith.constant dense<0.000000e+00> : vector<8x128xf32>
    %2 = tpu.matmul %0, %1, %cst {dimension_numbers = #tpu.dot_dimension_numbers<[1], [0], [0], [1], [0, 0, 1, 1], [], []>} : vector<8x32xf32>, vector<32x128xf32>, vector<8x128xf32> -> vector<8x128xf32>
    %c0_3 = arith.constant 0 : index
    %c0_4 = arith.constant 0 : index
    %3 = vector.load %arg3[%c0_3, %c0_4] : memref<1x128xf32, #tpu.memory_space<vmem>>, vector<1x128xf32>
    %4 = vector.broadcast %3 : vector<1x128xf32> to vector<8x128xf32>
    %5 = arith.addf %2, %4 : vector<8x128xf32>
    %cst_5 = arith.constant 0.000000e+00 : f32
    %6 = vector.broadcast %cst_5 : f32 to vector<8x128xf32>
    %7 = arith.maximumf %5, %6 : vector<8x128xf32>
    %c0_6 = arith.constant 0 : index
    %c0_7 = arith.constant 0 : index
    %8 = vector.load %arg4[%c0_6, %c0_7] : memref<128x128xf32, #tpu.memory_space<vmem>>, vector<128x128xf32>
    %cst_8 = arith.constant dense<0.000000e+00> : vector<8x128xf32>
    %9 = tpu.matmul %7, %8, %cst_8 {dimension_numbers = #tpu.dot_dimension_numbers<[1], [0], [0], [1], [0, 0, 1, 1], [], []>} : vector<8x128xf32>, vector<128x128xf32>, vector<8x128xf32> -> vector<8x128xf32>
    %c0_9 = arith.constant 0 : index
    %c0_10 = arith.constant 0 : index
    %10 = vector.load %arg5[%c0_9, %c0_10] : memref<1x128xf32, #tpu.memory_space<vmem>>, vector<1x128xf32>
    %11 = vector.broadcast %10 : vector<1x128xf32> to vector<8x128xf32>
    %12 = arith.addf %9, %11 : vector<8x128xf32>
    %cst_11 = arith.constant 0.000000e+00 : f32
    %13 = vector.broadcast %cst_11 : f32 to vector<8x128xf32>
    %14 = arith.maximumf %12, %13 : vector<8x128xf32>
    %c0_12 = arith.constant 0 : index
    %c0_13 = arith.constant 0 : index
    %15 = vector.load %arg6[%c0_12, %c0_13] : memref<128x32xf32, #tpu.memory_space<vmem>>, vector<128x32xf32>
    %cst_14 = arith.constant dense<0.000000e+00> : vector<8x32xf32>
    %16 = tpu.matmul %14, %15, %cst_14 {dimension_numbers = #tpu.dot_dimension_numbers<[1], [0], [0], [1], [0, 0, 1, 1], [], []>} : vector<8x128xf32>, vector<128x32xf32>, vector<8x32xf32> -> vector<8x32xf32>
    %c0_15 = arith.constant 0 : index
    %c0_16 = arith.constant 0 : index
    %17 = vector.load %arg7[%c0_15, %c0_16] : memref<1x32xf32, #tpu.memory_space<vmem>>, vector<1x32xf32>
    %18 = vector.broadcast %17 : vector<1x32xf32> to vector<8x32xf32>
    %19 = arith.addf %16, %18 : vector<8x32xf32>
    %c0_17 = arith.constant 0 : index
    %c0_18 = arith.constant 0 : index
    %20 = vector.load %arg8[%c0_17, %c0_18] : memref<8x32xf32, #tpu.memory_space<vmem>>, vector<8x32xf32>
    tpu.vector_store %arg8[%c0_17, %c0_18], %19 {strides = array<i32>} : memref<8x32xf32, #tpu.memory_space<vmem>>, vector<8x32xf32>,
    return
  }
  func.func @transform_0(%arg0: i32) -> (i32, i32) {
    %c0_i32 = arith.constant 0 : i32
    %c0_i32_0 = arith.constant 0 : i32
    return %arg0, %c0_i32 : i32, i32
  }
  func.func @transform_1(%arg0: i32) -> (i32, i32) {
    %c0_i32 = arith.constant 0 : i32
    %c0_i32_0 = arith.constant 0 : i32
    %c0_i32_1 = arith.constant 0 : i32
    return %c0_i32, %c0_i32_0 : i32, i32
  }
  func.func @transform_2(%arg0: i32) -> (i32, i32) {
    %c0_i32 = arith.constant 0 : i32
    %c0_i32_0 = arith.constant 0 : i32
    %c0_i32_1 = arith.constant 0 : i32
    return %c0_i32, %c0_i32_0 : i32, i32
  }
  func.func @transform_3(%arg0: i32) -> (i32, i32) {
    %c0_i32 = arith.constant 0 : i32
    %c0_i32_0 = arith.constant 0 : i32
    %c0_i32_1 = arith.constant 0 : i32
    return %c0_i32, %c0_i32_0 : i32, i32
  }
  func.func @transform_4(%arg0: i32) -> (i32, i32) {
    %c0_i32 = arith.constant 0 : i32
    %c0_i32_0 = arith.constant 0 : i32
    %c0_i32_1 = arith.constant 0 : i32
    return %c0_i32, %c0_i32_0 : i32, i32
  }
  func.func @transform_5(%arg0: i32) -> (i32, i32) {
    %c0_i32 = arith.constant 0 : i32
    %c0_i32_0 = arith.constant 0 : i32
    %c0_i32_1 = arith.constant 0 : i32
    return %c0_i32, %c0_i32_0 : i32, i32
  }
  func.func @transform_6(%arg0: i32) -> (i32, i32) {
    %c0_i32 = arith.constant 0 : i32
    %c0_i32_0 = arith.constant 0 : i32
    %c0_i32_1 = arith.constant 0 : i32
    return %c0_i32, %c0_i32_0 : i32, i32
  }
  func.func @transform_7(%arg0: i32) -> (i32, i32) {
    %c0_i32 = arith.constant 0 : i32
    %c0_i32_0 = arith.constant 0 : i32
    return %arg0, %c0_i32 : i32, i32
  }
}

</mosaic_0001>

<bundles_post_ra>
// kernel: odefunc_forward.1
= control target key start
LH: loop header
LB: loop body
LE: loop exit
PB: predicated region body
PF: predicated region fallthrough
CT: control target
= control target key end

     0   :  { %12 = vsyncpa [#allocation3], 0  ;;  %s948_s0 = inlined_call_operand.hbm [shape: f32[10,32], index: 0, kind: input, shape index: {}]   ;;  %s949_s1 = inlined_call_operand.vmem [shape: f32[32,128], index: 1, kind: input, shape index: {}]   ;;  %s950_s2 = inlined_call_operand.vmem [shape: f32[1,128], index: 2, kind: input, shape index: {}]   ;;  %s951_s3 = inlined_call_operand.vmem [shape: f32[128,128], index: 3, kind: input, shape index: {}]   ;;  %s952_s4 = inlined_call_operand.vmem [shape: f32[1,128], index: 4, kind: input, shape index: {}]   ;;  %s953_s5 = inlined_call_operand.vmem [shape: f32[128,32], index: 5, kind: input, shape index: {}]   ;;  %s954_s6 = inlined_call_operand.vmem [shape: f32[1,32], index: 6, kind: input, shape index: {}]   ;;  %s955_s7 = inlined_call_operand.hbm [shape: f32[10,32], index: 7, kind: output, shape index: {}]  }
   0x1   :  { %14 = vsyncpa [#allocation3 + $0x1], 0 }
   0x2   :  { %15 = vsyncpa [#allocation4], 0 }
   0x3   :  { %17 = vsyncpa [#allocation4 + $0x1], 0  ;;  %s698_s24 = smov 0   ;;  %s700_s25 = smov 0  }
   0x4   :  { %s702_s26 = smov 0   ;;  %s704_s27 = smov 0  }
   0x5 LB: > { %s719_s28 = sadd.s32 4294967295, %s656_s27   ;;  %s498_s29 = sadd.s32 4294967294, %s656_s27   ;;  %s656_s27 = sphi %s704_s27, %s967_s27   ;;  %s652_s26 = sphi %s702_s26, %s966_s26   ;;  %s648_s25 = sphi %s700_s25, %s965_s25   ;;  %s644_s24 = sphi %s698_s24, %s964_s24  }
   0x6   : > { %s723_s30 = sadd.s32 1, %s656_s27   ;;  %s30_s8 = sadd.s32 1, %s652_s26 }
   0x7   : > { %s27_s9 = ssub.s32 %s656_s27, %s723_s30  ;;  %p37_p0 = scmp.ne.s32.totalorder %s652_s26, %s648_s25 }
   0x8   : > { %p28_p1 = scmp.eq.s32.totalorder %s27_s9, 0  ;;  %p38_p2 = scmp.eq.s32.totalorder %s656_s27, 0 }
   0x9   : > { %p43_p3 = scmp.ne.s32.totalorder %s648_s25, %s644_s24  ;;  %p44_p4 = scmp.eq.s32.totalorder %s719_s28, 0 }
   0xa   : > { %s735_s10 = scalar_select %p28_p1, %s652_s26, %s30_s8  }
   0xb   : > { %p737_p5 = por %p38_p2, %p37_p0  ;;  %p741_p6 = por %p44_p4, %p43_p3 }
   0xc   : > { %956 = sst [smem:[#allocation8_spill]] %s735_s10  ;;  %p193_p7 = scmp.eq.s32.totalorder %s719_s28, 1 }
   0xd   : > { %p199_p8 = scmp.eq.s32.totalorder %s498_s29, 1  ;;  %p523_p10 = scmp.lt.s32.totalorder %s656_s27, 2 }
   0xe   : > { %p748_p11 = por %p193_p7, %p37_p0  ;;  %s237_s15 = sand.u32 1, %s652_s26  }
   0xf   : > { %p752_p12 = por %p199_p8, %p43_p3  ;;  %s502_s16 = sshll.u32 %s656_s27, 3 }
  0x10   : > { %s501_s17 = sshll.u32 %s237_s15, 3  ;;  %s245_s20 = scalar_lea.hbm %s948_s0, %s502_s16 }
  0x11   : > { %s247_s21 = sshll.u32 %s245_s20, 4  ;;  %s241_s22 = scalar_lea.vmem [#allocation2], %s501_s17  ;;  %s248_s21 = int_to_ptr.hbm [resolvable:$true] %s247_s21 }
  0x12   : > { %s249_s23 = sshll.u32 %s241_s22, 4  ;;  %p763_p13 = pnand %p523_p10, %p737_p5  ;;  %s250_s23 = int_to_ptr.vmem [resolvable:$true] %s249_s23 }
  0x13   : > { %p503_p0 = scmp.ge.s32.totalorder %s656_s27, 1  ;;  %p254_p1 = scmp.lt.s32.totalorder %s656_s27, 3 }
  0x14   : > { %s238_s8 = scalar_lea.sflag [#allocation3], %s237_s15  ;;  %s560_s9 = sshra.s32 %s248_s21, 4  ;;  %s561_s9 = int_to_ptr.hbm [resolvable:$true] %s560_s9 }
  0x15   : > { %s562_s10 = scalar_lea.hbm %s561_s9, 8  ;;  %p564_p3 = pneg %p763_p13 }
  0x16   : > { %p563_p2 = scmp.ne.s32.totalorder %s561_s9, %s562_s10  ;;  %s567_s11 = scalar_lea.hbm %s948_s0, 16 }
  0x17   : > { %p568_p5 = scmp.lt.s32.totalorder %s561_s9, %s948_s0  ;;  %p569_p8 = scmp.lt.s32.totalorder %s567_s11, %s562_s10 }
  0x18   : > { %p565_p4 = pnand %p564_p3, %p563_p2 }
  0x19   : > { %p570_p10 = por %p569_p8, %p568_p5 }
  0x1a   : > { %p566_p7 = pneg %p565_p4 }
  0x1c   : > { %p571_p9 = pnand %p570_p10, %p566_p7 }
  0x1e   : > { %574 = shalt.err (!%p571_p9)
}
  0x1f   : > { %518 = dma.hbm_to_vmem [thread:$0]  (!%p763_p13), %s248_s21, 128, %s250_s23, %s238_s8  }
  0x20   : > { %p255_p2 = pnand %p503_p0, %p254_p1 }
  0x21   : > { %s784_s15 = sand.u32 (!%p255_p2), 1, %s648_s25  }
  0x22   : > { %258 = sbr.rel (%p255_p2) target bundleno = 445 (0x1bd), region = 48  ;;  %s504_s10 = sshll.u32 (!%p255_p2), %s784_s15, 3 }
  0x23   : > { %s261_s20 = scalar_lea.sflag (!%p255_p2), [#allocation3], %s784_s15  ;;  %s264_s22 = scalar_lea.vmem (!%p255_p2), [#allocation2], %s504_s10 }
  0x27   : > { %635 = dma.done.wait (%p741_p6), %s261_s20, 128  }
  0x28   : > { %637 = vsyncadd (%p741_p6), %s261_s20, 4294967168  ;;  %v300_v0 = vld [vmem:[%s949_s1 + $0x18] sm:$0xff]  ;;  %v299_v1 = vld [vmem:[%s949_s1 + $0x10] sm:$0xff]  ;;  %vm305_vm0 = vcmask 261120   ;;  %s508_s20 = sshll.u32 %s719_s28, 3  ;;  %s295_s16 = scalar_lea.vmem [#allocation5], %s504_s10 }
  0x29   : > { %321 = vmatpush.msra.mxu0 %v300_v0  ;;  %v345_v2 = vld [vmem:[%s951_s3 + $0x78] sm:$0xff]  ;;  %v298_v3 = vld [vmem:[%s949_s1 + $0x8] sm:$0xff]  ;;  %v344_v4 = vld [vmem:[%s951_s3 + $0x70] sm:$0xff]  ;;  %s423_s29 = scalar_lea.hbm %s955_s7, %s508_s20  ;;  %s425_s17 = sshll.u32 %s295_s16, 4  ;;  %s426_s17 = int_to_ptr.vmem [resolvable:$true] %s425_s17 }
  0x2a   : > { %350 = vmatpush.msra.mxu1 %v345_v2  ;;  %v343_v5 = vld [vmem:[%s951_s3 + $0x68] sm:$0xff]  ;;  %v297_v6 = vld [vmem:[%s949_s1] sm:$0xff]  ;;  %v341_v9 = vld [vmem:[%s951_s3 + $0x58] sm:$0xff]  ;;  %s427_s11 = sshll.u32 %s423_s29, 4  ;;  %s413_s28 = scalar_lea.sflag [#allocation4], %s784_s15  ;;  %s428_s11 = int_to_ptr.hbm [resolvable:$true] %s427_s11 }
  0x2b   : > { %322 = vmatpush.msra.mxu0 %v299_v1  ;;  %v296_v7 = vld [vmem:[%s264_s22] sm:$0xff]  ;;  %v340_v10 = vld [vmem:[%s951_s3 + $0x50] sm:$0xff]  ;;  %v337_v13 = vld [vmem:[%s951_s3 + $0x38] sm:$0xff]  ;;  %s604_s22 = sshra.s32 %s428_s11, 4  ;;  %s610_s10 = scalar_lea.hbm %s955_s7, 16  ;;  %s605_s22 = int_to_ptr.hbm [resolvable:$true] %s604_s22 }
  0x2c   : > { %351 = vmatpush.msra.mxu1 %v344_v4  ;;  %v342_v8 = vld [vmem:[%s951_s3 + $0x60] sm:$0xff]  ;;  %v339_v11 = vld [vmem:[%s951_s3 + $0x48] sm:$0xff]  ;;  %v336_v14 = vld [vmem:[%s951_s3 + $0x30] sm:$0xff]  ;;  %s606_s12 = scalar_lea.hbm %s605_s22, 8  ;;  %p611_p0 = scmp.lt.s32.totalorder %s605_s22, %s955_s7 }
  0x2d   : > { %323 = vmatpush.msra.mxu0 %v298_v3  ;;  %v338_v12 = vld [vmem:[%s951_s3 + $0x40] sm:$0xff]  ;;  %v335_v15 = vld [vmem:[%s951_s3 + $0x28] sm:$0xff]  ;;  %v333_v17 = vld [vmem:[%s951_s3 + $0x18] sm:$0xff]  ;;  %p607_p6 = scmp.ne.s32.totalorder %s605_s22, %s606_s12  ;;  %p612_p1 = scmp.lt.s32.totalorder %s610_s10, %s606_s12 }
  0x2e   : > { %352 = vmatpush.msra.mxu1 %v343_v5  ;;  %v334_v16 = vld [vmem:[%s951_s3 + $0x20] sm:$0xff]  ;;  %v332_v18 = vld [vmem:[%s951_s3 + $0x10] sm:$0xff]  ;;  %v331_v19 = vld [vmem:[%s951_s3 + $0x8] sm:$0xff] }
  0x2f   : > { %324 = vmatpush.msra.mxu0 %v297_v6  ;;  %v330_v20 = vld [vmem:[%s951_s3] sm:$0xff]  ;;  %v386_v21 = vld [vmem:[%s953_s5 + $0x78] sm:$0xff]  ;;  %v385_v22 = vld [vmem:[%s953_s5 + $0x70] sm:$0xff]  ;;  %p608_p9 = pnand %p607_p6, %p748_p11  ;;  %p613_p3 = por %p612_p1, %p611_p0 }
  0x30   : > { %506 = vmatmul.msk.f32.vlgmr.msra.gmra.mxu0 %vm305_vm0, %v296_v7  ;;  %353 = vmatpush.msra.mxu1 %v342_v8  ;;  %v384_v23 = vld [vmem:[%s953_s5 + $0x68] sm:$0xff]  ;;  %v383_v24 = vld [vmem:[%s953_s5 + $0x60] sm:$0xff]  ;;  %v382_v25 = vld [vmem:[%s953_s5 + $0x58] sm:$0xff] }
  0x31   : > { %391 = vmatpush.msra.mxu2 %v386_v21  ;;  %v381_v26 = vld [vmem:[%s953_s5 + $0x50] sm:$0xff]  ;;  %v380_v27 = vld [vmem:[%s953_s5 + $0x48] sm:$0xff]  ;;  %v379_v28 = vld [vmem:[%s953_s5 + $0x40] sm:$0xff]  ;;  %p609_p13 = pneg %p608_p9 }
  0x32   : > { %354 = vmatpush.msra.mxu1 %v341_v9  ;;  %v378_v29 = vld [vmem:[%s953_s5 + $0x38] sm:$0xff]  ;;  %v377_v30 = vld [vmem:[%s953_s5 + $0x30] sm:$0xff]  ;;  %v376_v31 = vld [vmem:[%s953_s5 + $0x28] sm:$0xff] }
  0x33   : > { %392 = vmatpush.msra.mxu2 %v385_v22  ;;  %v375_v32 = vld [vmem:[%s953_s5 + $0x20] sm:$0xff]  ;;  %v374_v33 = vld [vmem:[%s953_s5 + $0x18] sm:$0xff]  ;;  %v373_v38 = vld [vmem:[%s953_s5 + $0x10] sm:$0xff]  ;;  %p614_p4 = pnand %p613_p3, %p609_p13 }
  0x34   : > { %355 = vmatpush.msra.mxu1 %v340_v10  ;;  %v557_v34 = vld [vmem:[%s950_s2] ss:$0 sm:$0xff]  ;;  %v372_v39 = vld [vmem:[%s953_s5 + $0x8] sm:$0xff] }
  0x35   : > { %393 = vmatpush.msra.mxu2 %v384_v23  ;;  %v371_v40 = vld [vmem:[%s953_s5] sm:$0xff] }
  0x36   : > { %356 = vmatpush.msra.mxu1 %v339_v11  ;;  %v558_v41 = vld [vmem:[%s952_s4] ss:$0 sm:$0xff] }
  0x37   : > { %394 = vmatpush.msra.mxu2 %v383_v24  ;;  %v559_v45 = vld [vmem:[%s954_s6] ss:$0 sm:$0xff] }
  0x38   : > { %357 = vmatpush.msra.mxu1 %v338_v12 }
  0x39   : > { %395 = vmatpush.msra.mxu2 %v382_v25 }
  0x3a   : > { %358 = vmatpush.msra.mxu1 %v337_v13 }
  0x3b   : > { %396 = vmatpush.msra.mxu2 %v381_v26 }
  0x3c   : > { %359 = vmatpush.msra.mxu1 %v336_v14 }
  0x3d   : > { %397 = vmatpush.msra.mxu2 %v380_v27 }
  0x3e   : > { %360 = vmatpush.msra.mxu1 %v335_v15 }
  0x3f   : > { %398 = vmatpush.msra.mxu2 %v379_v28 }
  0x40   : > { %361 = vmatpush.msra.mxu1 %v334_v16 }
  0x41   : > { %399 = vmatpush.msra.mxu2 %v378_v29 }
  0x42   : > { %362 = vmatpush.msra.mxu1 %v333_v17 }
  0x43   : > { %400 = vmatpush.msra.mxu2 %v377_v30 }
  0x44   : > { %363 = vmatpush.msra.mxu1 %v332_v18 }
  0x45   : > { %401 = vmatpush.msra.mxu2 %v376_v31 }
  0x46   : > { %364 = vmatpush.msra.mxu1 %v331_v19 }
  0x47   : > { %402 = vmatpush.msra.mxu2 %v375_v32 }
  0x48   : > { %365 = vmatpush.msra.mxu1 %v330_v20 }
  0x49   : > { %403 = vmatpush.msra.mxu2 %v374_v33 }
  0x4b   : > { %404 = vmatpush.msra.mxu2 %v373_v38 }
  0x4d   : > { %405 = vmatpush.msra.mxu2 %v372_v39 }
  0x4f   : > { %406 = vmatpush.msra.mxu2 %v371_v40 }
  0xad   : > { %v326_v35 = vpop.f32.mrf.mxu0 }
  0xae   : > { %v327_v36 = vadd.f32 %v557_v34, %v326_v35 }
  0xb0   : > { %v329_v37 = vmax.f32 %v327_v36, 0.0 }
  0xb2   : > { %366 = vmatmul.f32.vlgmr.msra.gmra.mxu1 %v329_v37 }
 0x12f   : > { %v367_v42 = vpop.f32.mrf.mxu1 }
 0x130   : > { %v368_v43 = vadd.f32 %v558_v41, %v367_v42 }
 0x132   : > { %v370_v44 = vmax.f32 %v368_v43, 0.0 }
 0x134   : > { %407 = vmatmul.f32.vlgmr.msra.gmra.mxu2 %v370_v44 }
 0x1b7   : > { %v408_v46 = vpop.f32.mrf.mxu2 }
 0x1b8   : > { %v409_v47 = vadd.f32 %v559_v45, %v408_v46 }
 0x1ba   : > { %411 = vst.msk [vmem:[%s295_s16] sm:$0xff] %vm305_vm0, %v409_v47 }
 0x1bb   : > { %617 = shalt.err (!%p614_p4)
}
 0x1bc   : > { %513 = dma.vmem_to_hbm [thread:$0]  (%p748_p11), %s426_s17, 128, %s428_s11, %s413_s28  }
 0x1bd PF: > { %s439_s15 = sand.u32 1, %s644_s24   ;;  %p962_p7 = scmp.ge.s32.totalorder %s656_s27, 2 }
 0x1be   : > { %s440_s23 = scalar_lea.sflag [#allocation4], %s439_s15 }
 0x1bf   : > { %p520_p5 = pnand %p962_p7, %p752_p12 }
 0x1c1   : > { %p521_p8 = pneg %p520_p5 }
 0x1c3   : > { %639 = dma.done.wait (%p521_p8), %s440_s23, 128  }
 0x1c4   : > { %641 = vsyncadd (%p521_p8), %s440_s23, 4294967168  ;;  %s963_s29 = sld [smem:[#allocation8_spill]]  ;;  %p20_p10 = scmp.ge.s32.totalorder %s723_s30, 4  }
 0x1c5   : > { %s964_s24 = smov %s648_s25  ;;  %s965_s25 = smov %s652_s26 }
 0x1c6   : > { %s967_s27 = smov %s723_s30  ;;  %22 = sbr.rel (!%p20_p10) target bundleno = 5 (0x5), region = 93 }
 0x1ca   : > { %s966_s26 = smov %s963_s29 }
 0x1cb   :  { %446 = vsyncpa [#allocation3], 1 }
 0x1cc   :  { %448 = vsyncpa [#allocation3 + $0x1], 1 }
 0x1cd   :  { %449 = vsyncpa [#allocation4], 1 }
 0x1ce   :  { %451 = vsyncpa [#allocation4 + $0x1], 1 }

</bundles_post_ra>
